<compile_context>
chip_gen: v6e
topology: v6e:2x2x1
jax: 0.10.0
libtpu: 0.0.40
codegen_flags: <defaults>
</compile_context>

<pallas_src>
import math

import jax
import jax.numpy as jnp
from jax.experimental import pallas as pl
from jax.experimental.pallas import tpu as pltpu

# Small synthetic shapes consistent with the forward pass.
B, S, H, V = 2, 8, 32, 64          # batch, seq, hidden (=output_dim), vocab
FFN = 4 * H


def _layernorm(x, g, b, eps=1e-12):
    mu = jnp.mean(x, axis=-1, keepdims=True)
    var = jnp.mean((x - mu) ** 2, axis=-1, keepdims=True)
    return (x - mu) * jax.lax.rsqrt(var + eps) * g + b


def bi_encoder_kernel(x_ref, xcls_ref, bias_ref,
                      wqpad_ref, wkv_ref, wopad_ref,
                      w1_ref, w2_ref, wout_t_ref,
                      vecs_ref, out_ref):
    x = x_ref[...]                         # [B*S, H] all token embeddings (f32)
    x_cls = xcls_ref[...]                  # [B, H]   CLS-row embeddings (f32)
    bias = bias_ref[...]                   # [B, B*S] pad-mask + cross-batch -1e9

    vecs = vecs_ref[...]                   # [7, FFN] packed vectors (f32)
    b1 = vecs[0:1, :]                      # [1, FFN]
    ln1g, ln1b = vecs[1:2, :H], vecs[2:3, :H]
    b2 = vecs[3:4, :H]
    ln2g, ln2b = vecs[4:5, :H], vecs[5:6, :H]
    bout = vecs[6:7, :H]

    # ---- single-head self-attention, CLS queries only ----
    xb = x.astype(jnp.bfloat16)
    xcb = x_cls.astype(jnp.bfloat16)

    # K|V for every token, Q (scale folded in, zero-padded on the V lanes) for CLS only.
    kv = jnp.dot(xb, wkv_ref[...], preferred_element_type=jnp.float32)      # [B*S, 2H]
    q = jnp.dot(xcb, wqpad_ref[...], preferred_element_type=jnp.float32)    # [B, 2H]
    kvb = kv.astype(jnp.bfloat16)

    # Block-diagonal scores in one contraction: q's V-lanes are exact zeros, so
    # contracting 2H lanes yields q·k only.  Bias masks pads + cross-batch keys.
    dn = (((1,), (1,)), ((), ()))
    scores = jax.lax.dot_general(q.astype(jnp.bfloat16), kvb, dn,
                                 preferred_element_type=jnp.float32)        # [B, B*S]
    scores = scores + bias
    scores = scores - jnp.max(scores, axis=-1, keepdims=True)
    p = jnp.exp(scores)
    p = p * pl.reciprocal(jnp.sum(p, axis=-1, keepdims=True), approx=True)

    # P @ [K|V] -> [B, 2H]; wo zero-padded on its K-rows kills the P@K half.
    attn_kv = jnp.dot(p.astype(jnp.bfloat16), kvb,
                      preferred_element_type=jnp.float32)                   # [B, 2H]
    attn = jnp.dot(attn_kv.astype(jnp.bfloat16), wopad_ref[...],
                   preferred_element_type=jnp.float32)                      # [B, H]

    h = _layernorm(x_cls + attn, ln1g, ln1b)                                # [B, H]

    # ---- feed-forward (CLS rows only) ----
    f = jnp.dot(h.astype(jnp.bfloat16), w1_ref[...],
                preferred_element_type=jnp.float32) + b1                    # [B, FFN]
    f = jax.nn.gelu(f)                                                      # tanh approx
    f = jnp.dot(f.astype(jnp.bfloat16), w2_ref[...],
                preferred_element_type=jnp.float32) + b2                    # [B, H]
    hidden = _layernorm(h + f, ln2g, ln2b)                                  # CLS hidden

    # ---- BiEncoder head: nn.Linear(output_dim, output_dim) on the CLS rows ----
    out_ref[...] = jnp.dot(hidden.astype(jnp.bfloat16), wout_t_ref[...],
                           preferred_element_type=jnp.float32) + bout


def make_params(key):
    ks = jax.random.split(key, 16)

    def init(k, shape, scale=0.05):
        return jax.random.normal(k, shape, jnp.float32) * scale

    return dict(
        emb=init(ks[0], (V, H), 0.02),
        pos=init(ks[1], (S, H), 0.02),
        wq=init(ks[2], (H, H)), wk=init(ks[3], (H, H)),
        wv=init(ks[4], (H, H)), wo=init(ks[5], (H, H)),
        ln1g=jnp.ones((1, H), jnp.float32), ln1b=jnp.zeros((1, H), jnp.float32),
        w1=init(ks[6], (H, FFN)), b1=init(ks[7], (1, FFN), 0.01),
        w2=init(ks[8], (FFN, H)), b2=init(ks[9], (1, H), 0.01),
        ln2g=jnp.ones((1, H), jnp.float32), ln2b=jnp.zeros((1, H), jnp.float32),
        wout=init(ks[10], (H, H)),           # PyTorch Linear weight [out, in]
        bout=init(ks[11], (1, H), 0.01),
    )


def pack_params(p):
    """One-time host-side packing: fold scale into wq, zero-pad wq/wo so no
    in-kernel lane slicing is needed, pre-transpose head, cast weights to bf16,
    and pack every per-channel vector into one [7, FFN] tile."""
    scale = 1.0 / math.sqrt(H)
    zH = jnp.zeros((H, H), jnp.float32)
    wqpad = jnp.concatenate([p["wq"] * scale, zH], axis=1)        # [H, 2H]
    wkv = jnp.concatenate([p["wk"], p["wv"]], axis=1)             # [H, 2H]
    wopad = jnp.concatenate([zH, p["wo"]], axis=0)                # [2H, H]

    def pad_lanes(v):                                             # [1,H] -> [1,FFN]
        return jnp.pad(v, ((0, 0), (0, FFN - H)))

    vecs = jnp.concatenate(
        [p["b1"],
         pad_lanes(p["ln1g"]), pad_lanes(p["ln1b"]), pad_lanes(p["b2"]),
         pad_lanes(p["ln2g"]), pad_lanes(p["ln2b"]), pad_lanes(p["bout"])],
        axis=0)                                                   # [7, FFN]

    bf = lambda a: a.astype(jnp.bfloat16)
    return dict(
        emb=p["emb"], pos=p["pos"],
        wqpad=bf(wqpad), wkv=bf(wkv), wopad=bf(wopad),
        w1=bf(p["w1"]), w2=bf(p["w2"]), wout_t=bf(p["wout"].T),
        vecs=vecs,
    )


def bi_encoder_forward(packed, ids, mask=None):
    if mask is None:
        mask = jnp.ones(ids.shape, jnp.float32)
    # Glue: embedding gather + position embeddings (stay in XLA).
    x3 = packed["emb"][ids] + packed["pos"][None, :, :]           # [B, S, H]
    x = x3.reshape(B * S, H)
    x_cls = x3[:, 0, :]                                           # [B, H] (free slice)

    # Additive attention bias for the block-diagonal formulation:
    # own-batch keys get the HF-style pad bias, cross-batch keys get -1e9.
    pad_bias = (mask.astype(jnp.float32) - 1.0) * 1e9             # [B, S]
    eye = jnp.eye(B, dtype=jnp.float32)                           # [B, B]
    bias = (eye[:, :, None] * pad_bias[None, :, :]
            + (1.0 - eye)[:, :, None] * (-1e9)).reshape(B, B * S)

    vmem = pl.BlockSpec(memory_space=pltpu.MemorySpace.VMEM)
    out = pl.pallas_call(
        bi_encoder_kernel,
        out_shape=jax.ShapeDtypeStruct((B, H), jnp.float32),
        in_specs=[vmem] * 10,
        out_specs=vmem,
    )(x, x_cls, bias,
      packed["wqpad"], packed["wkv"], packed["wopad"],
      packed["w1"], packed["w2"], packed["wout_t"], packed["vecs"])
    return out


def bi_encoder_reference(params, ids, mask=None):
    """Pure-JAX reference mirroring the original (unpacked, f32) math."""
    if mask is None:
        mask = jnp.ones(ids.shape, jnp.float32)
    x = params["emb"][ids] + params["pos"][None, :, :]
    m = mask.astype(jnp.float32)[:, None, :]                      # [B, 1, S]
    q = x @ params["wq"]; k = x @ params["wk"]; v = x @ params["wv"]
    scores = jnp.einsum("bqh,bkh->bqk", q, k) / math.sqrt(H) + (m - 1.0) * 1e9
    p = jax.nn.softmax(scores, axis=-1)
    attn = jnp.einsum("bqk,bkh->bqh", p, v) @ params["wo"]
    h = _layernorm(x + attn, params["ln1g"], params["ln1b"])
    f = jax.nn.gelu(h @ params["w1"] + params["b1"]) @ params["w2"] + params["b2"]
    hidden = _layernorm(h + f, params["ln2g"], params["ln2b"])
    cls = hidden[:, 0, :]
    return cls @ params["wout"].T + params["bout"]


if __name__ == "__main__":
    key = jax.random.PRNGKey(0)
    k_ids, k_params = jax.random.split(key)

    ids = jax.random.randint(k_ids, (B, S), 0, V, dtype=jnp.int32)
    mask = jnp.ones((B, S), jnp.float32).at[1, S - 2:].set(0.0)  # pad last 2 tokens of row 1
    params = make_params(k_params)
    packed = pack_params(params)

    result = bi_encoder_forward(packed, ids, mask)
    jax.block_until_ready(result)
    assert result.shape == (B, H) and result.dtype == jnp.float32

    ref = bi_encoder_reference(params, ids, mask)
    assert jnp.allclose(result, ref, atol=2e-2, rtol=2e-2), "kernel mismatch vs reference"

    print("KERNEL_OK")
</pallas_src>

<mosaic_0001>
module attributes {stable_mosaic.version = 11 : i64} {
  func.func @bi_encoder_kernel(%arg0: memref<16x32xf32, #tpu.memory_space<vmem>>, %arg1: memref<2x32xf32, #tpu.memory_space<vmem>>, %arg2: memref<2x16xf32, #tpu.memory_space<vmem>>, %arg3: memref<32x64xbf16, #tpu.memory_space<vmem>>, %arg4: memref<32x64xbf16, #tpu.memory_space<vmem>>, %arg5: memref<64x32xbf16, #tpu.memory_space<vmem>>, %arg6: memref<32x128xbf16, #tpu.memory_space<vmem>>, %arg7: memref<128x32xbf16, #tpu.memory_space<vmem>>, %arg8: memref<32x32xbf16, #tpu.memory_space<vmem>>, %arg9: memref<7x128xf32, #tpu.memory_space<vmem>>, %arg10: memref<2x32xf32, #tpu.memory_space<vmem>>) attributes {dimension_semantics = [], scalar_prefetch = 0 : i64, scratch_operands = 0 : i64, tpu.core_type = #tpu.core_type<tc>} {
    %c0 = arith.constant 0 : index
    %c0_0 = arith.constant 0 : index
    %0 = vector.load %arg0[%c0, %c0_0] : memref<16x32xf32, #tpu.memory_space<vmem>>, vector<16x32xf32>
    %c0_1 = arith.constant 0 : index
    %c0_2 = arith.constant 0 : index
    %1 = vector.load %arg1[%c0_1, %c0_2] : memref<2x32xf32, #tpu.memory_space<vmem>>, vector<2x32xf32>
    %c0_3 = arith.constant 0 : index
    %c0_4 = arith.constant 0 : index
    %2 = vector.load %arg2[%c0_3, %c0_4] : memref<2x16xf32, #tpu.memory_space<vmem>>, vector<2x16xf32>
    %c0_5 = arith.constant 0 : index
    %c0_6 = arith.constant 0 : index
    %3 = vector.load %arg9[%c0_5, %c0_6] : memref<7x128xf32, #tpu.memory_space<vmem>>, vector<7x128xf32>
    %4 = vector.extract_strided_slice %3 {offsets = [0, 0], sizes = [1, 128], strides = [1, 1]} : vector<7x128xf32> to vector<1x128xf32>
    %5 = vector.extract_strided_slice %3 {offsets = [1, 0], sizes = [1, 32], strides = [1, 1]} : vector<7x128xf32> to vector<1x32xf32>
    %6 = vector.extract_strided_slice %3 {offsets = [2, 0], sizes = [1, 32], strides = [1, 1]} : vector<7x128xf32> to vector<1x32xf32>
    %7 = vector.extract_strided_slice %3 {offsets = [3, 0], sizes = [1, 32], strides = [1, 1]} : vector<7x128xf32> to vector<1x32xf32>
    %8 = vector.extract_strided_slice %3 {offsets = [4, 0], sizes = [1, 32], strides = [1, 1]} : vector<7x128xf32> to vector<1x32xf32>
    %9 = vector.extract_strided_slice %3 {offsets = [5, 0], sizes = [1, 32], strides = [1, 1]} : vector<7x128xf32> to vector<1x32xf32>
    %10 = vector.extract_strided_slice %3 {offsets = [6, 0], sizes = [1, 32], strides = [1, 1]} : vector<7x128xf32> to vector<1x32xf32>
    %11 = arith.truncf %0 : vector<16x32xf32> to vector<16x32xbf16>
    %12 = arith.truncf %1 : vector<2x32xf32> to vector<2x32xbf16>
    %c0_7 = arith.constant 0 : index
    %c0_8 = arith.constant 0 : index
    %13 = vector.load %arg4[%c0_7, %c0_8] : memref<32x64xbf16, #tpu.memory_space<vmem>>, vector<32x64xbf16>
    %cst = arith.constant dense<0.000000e+00> : vector<16x64xf32>
    %14 = tpu.matmul %11, %13, %cst {dimension_numbers = #tpu.dot_dimension_numbers<[1], [0], [0], [1], [0, 0, 1, 1], [], []>} : vector<16x32xbf16>, vector<32x64xbf16>, vector<16x64xf32> -> vector<16x64xf32>
    %c0_9 = arith.constant 0 : index
    %c0_10 = arith.constant 0 : index
    %15 = vector.load %arg3[%c0_9, %c0_10] : memref<32x64xbf16, #tpu.memory_space<vmem>>, vector<32x64xbf16>
    %cst_11 = arith.constant dense<0.000000e+00> : vector<2x64xf32>
    %16 = tpu.matmul %12, %15, %cst_11 {dimension_numbers = #tpu.dot_dimension_numbers<[1], [0], [0], [1], [0, 0, 1, 1], [], []>} : vector<2x32xbf16>, vector<32x64xbf16>, vector<2x64xf32> -> vector<2x64xf32>
    %17 = arith.truncf %14 : vector<16x64xf32> to vector<16x64xbf16>
    %18 = arith.truncf %16 : vector<2x64xf32> to vector<2x64xbf16>
    %cst_12 = arith.constant dense<0.000000e+00> : vector<2x16xf32>
    %19 = tpu.matmul %18, %17, %cst_12 {dimension_numbers = #tpu.dot_dimension_numbers<[1], [1], [0], [0], [0, 0, 1, 0], [], []>} : vector<2x64xbf16>, vector<16x64xbf16>, vector<2x16xf32> -> vector<2x16xf32>
    %20 = arith.addf %19, %2 : vector<2x16xf32>
    %cst_13 = arith.constant dense<0xFF800000> : vector<2xf32>
    %21 = vector.multi_reduction <maximumf>, %20, %cst_13 [1] : vector<2x16xf32> to vector<2xf32>
    %22 = vector.shape_cast %21 : vector<2xf32> to vector<2x1xf32>
    %23 = vector.broadcast %22 : vector<2x1xf32> to vector<2x16xf32>
    %24 = arith.subf %20, %23 : vector<2x16xf32>
    %25 = math.exp %24 : vector<2x16xf32>
    %cst_14 = arith.constant dense<0.000000e+00> : vector<2xf32>
    %26 = vector.multi_reduction <add>, %25, %cst_14 [1] : vector<2x16xf32> to vector<2xf32>
    %27 = vector.shape_cast %26 : vector<2xf32> to vector<2x1xf32>
    %28 = tpu.reciprocal %27 {approx = true} : vector<2x1xf32> -> vector<2x1xf32>
    %29 = vector.broadcast %28 : vector<2x1xf32> to vector<2x16xf32>
    %30 = arith.mulf %25, %29 : vector<2x16xf32>
    %31 = arith.truncf %30 : vector<2x16xf32> to vector<2x16xbf16>
    %cst_15 = arith.constant dense<0.000000e+00> : vector<2x64xf32>
    %32 = tpu.matmul %31, %17, %cst_15 {dimension_numbers = #tpu.dot_dimension_numbers<[1], [0], [0], [1], [0, 0, 1, 1], [], []>} : vector<2x16xbf16>, vector<16x64xbf16>, vector<2x64xf32> -> vector<2x64xf32>
    %33 = arith.truncf %32 : vector<2x64xf32> to vector<2x64xbf16>
    %c0_16 = arith.constant 0 : index
    %c0_17 = arith.constant 0 : index
    %34 = vector.load %arg5[%c0_16, %c0_17] : memref<64x32xbf16, #tpu.memory_space<vmem>>, vector<64x32xbf16>
    %cst_18 = arith.constant dense<0.000000e+00> : vector<2x32xf32>
    %35 = tpu.matmul %33, %34, %cst_18 {dimension_numbers = #tpu.dot_dimension_numbers<[1], [0], [0], [1], [0, 0, 1, 1], [], []>} : vector<2x64xbf16>, vector<64x32xbf16>, vector<2x32xf32> -> vector<2x32xf32>
    %36 = arith.addf %1, %35 : vector<2x32xf32>
    %cst_19 = arith.constant dense<0.000000e+00> : vector<2xf32>
    %37 = vector.multi_reduction <add>, %36, %cst_19 [1] : vector<2x32xf32> to vector<2xf32>
    %38 = vector.shape_cast %37 : vector<2xf32> to vector<2x1xf32>
    %cst_20 = arith.constant 3.200000e+01 : f32
    %39 = vector.broadcast %cst_20 : f32 to vector<2x1xf32>
    %40 = arith.divf %38, %39 : vector<2x1xf32>
    %41 = vector.broadcast %40 : vector<2x1xf32> to vector<2x32xf32>
    %42 = arith.subf %36, %41 : vector<2x32xf32>
    %43 = arith.mulf %42, %42 : vector<2x32xf32>
    %cst_21 = arith.constant dense<0.000000e+00> : vector<2xf32>
    %44 = vector.multi_reduction <add>, %43, %cst_21 [1] : vector<2x32xf32> to vector<2xf32>
    %45 = vector.shape_cast %44 : vector<2xf32> to vector<2x1xf32>
    %cst_22 = arith.constant 3.200000e+01 : f32
    %46 = vector.broadcast %cst_22 : f32 to vector<2x1xf32>
    %47 = arith.divf %45, %46 : vector<2x1xf32>
    %48 = vector.broadcast %40 : vector<2x1xf32> to vector<2x32xf32>
    %49 = arith.subf %36, %48 : vector<2x32xf32>
    %cst_23 = arith.constant 9.99999996E-13 : f32
    %50 = vector.broadcast %cst_23 : f32 to vector<2x1xf32>
    %51 = arith.addf %47, %50 : vector<2x1xf32>
    %52 = math.rsqrt %51 : vector<2x1xf32>
    %53 = vector.broadcast %52 : vector<2x1xf32> to vector<2x32xf32>
    %54 = arith.mulf %49, %53 : vector<2x32xf32>
    %55 = vector.broadcast %5 : vector<1x32xf32> to vector<2x32xf32>
    %56 = arith.mulf %54, %55 : vector<2x32xf32>
    %57 = vector.broadcast %6 : vector<1x32xf32> to vector<2x32xf32>
    %58 = arith.addf %56, %57 : vector<2x32xf32>
    %59 = arith.truncf %58 : vector<2x32xf32> to vector<2x32xbf16>
    %c0_24 = arith.constant 0 : index
    %c0_25 = arith.constant 0 : index
    %60 = vector.load %arg6[%c0_24, %c0_25] : memref<32x128xbf16, #tpu.memory_space<vmem>>, vector<32x128xbf16>
    %cst_26 = arith.constant dense<0.000000e+00> : vector<2x128xf32>
    %61 = tpu.matmul %59, %60, %cst_26 {dimension_numbers = #tpu.dot_dimension_numbers<[1], [0], [0], [1], [0, 0, 1, 1], [], []>} : vector<2x32xbf16>, vector<32x128xbf16>, vector<2x128xf32> -> vector<2x128xf32>
    %62 = vector.broadcast %4 : vector<1x128xf32> to vector<2x128xf32>
    %63 = arith.addf %61, %62 : vector<2x128xf32>
    %64 = arith.mulf %63, %63 : vector<2x128xf32>
    %65 = arith.mulf %63, %64 : vector<2x128xf32>
    %cst_27 = arith.constant 4.471500e-02 : f32
    %66 = vector.broadcast %cst_27 : f32 to vector<2x128xf32>
    %67 = arith.mulf %66, %65 : vector<2x128xf32>
    %68 = arith.addf %63, %67 : vector<2x128xf32>
    %cst_28 = arith.constant 0.797884583 : f32
    %69 = vector.broadcast %cst_28 : f32 to vector<2x128xf32>
    %70 = arith.mulf %69, %68 : vector<2x128xf32>
    %71 = math.tanh %70 : vector<2x128xf32>
    %cst_29 = arith.constant 1.000000e+00 : f32
    %72 = vector.broadcast %cst_29 : f32 to vector<2x128xf32>
    %73 = arith.addf %72, %71 : vector<2x128xf32>
    %cst_30 = arith.constant 5.000000e-01 : f32
    %74 = vector.broadcast %cst_30 : f32 to vector<2x128xf32>
    %75 = arith.mulf %74, %73 : vector<2x128xf32>
    %76 = arith.mulf %63, %75 : vector<2x128xf32>
    %77 = arith.truncf %76 : vector<2x128xf32> to vector<2x128xbf16>
    %c0_31 = arith.constant 0 : index
    %c0_32 = arith.constant 0 : index
    %78 = vector.load %arg7[%c0_31, %c0_32] : memref<128x32xbf16, #tpu.memory_space<vmem>>, vector<128x32xbf16>
    %cst_33 = arith.constant dense<0.000000e+00> : vector<2x32xf32>
    %79 = tpu.matmul %77, %78, %cst_33 {dimension_numbers = #tpu.dot_dimension_numbers<[1], [0], [0], [1], [0, 0, 1, 1], [], []>} : vector<2x128xbf16>, vector<128x32xbf16>, vector<2x32xf32> -> vector<2x32xf32>
    %80 = vector.broadcast %7 : vector<1x32xf32> to vector<2x32xf32>
    %81 = arith.addf %79, %80 : vector<2x32xf32>
    %82 = arith.addf %58, %81 : vector<2x32xf32>
    %cst_34 = arith.constant dense<0.000000e+00> : vector<2xf32>
    %83 = vector.multi_reduction <add>, %82, %cst_34 [1] : vector<2x32xf32> to vector<2xf32>
    %84 = vector.shape_cast %83 : vector<2xf32> to vector<2x1xf32>
    %cst_35 = arith.constant 3.200000e+01 : f32
    %85 = vector.broadcast %cst_35 : f32 to vector<2x1xf32>
    %86 = arith.divf %84, %85 : vector<2x1xf32>
    %87 = vector.broadcast %86 : vector<2x1xf32> to vector<2x32xf32>
    %88 = arith.subf %82, %87 : vector<2x32xf32>
    %89 = arith.mulf %88, %88 : vector<2x32xf32>
    %cst_36 = arith.constant dense<0.000000e+00> : vector<2xf32>
    %90 = vector.multi_reduction <add>, %89, %cst_36 [1] : vector<2x32xf32> to vector<2xf32>
    %91 = vector.shape_cast %90 : vector<2xf32> to vector<2x1xf32>
    %cst_37 = arith.constant 3.200000e+01 : f32
    %92 = vector.broadcast %cst_37 : f32 to vector<2x1xf32>
    %93 = arith.divf %91, %92 : vector<2x1xf32>
    %94 = vector.broadcast %86 : vector<2x1xf32> to vector<2x32xf32>
    %95 = arith.subf %82, %94 : vector<2x32xf32>
    %cst_38 = arith.constant 9.99999996E-13 : f32
    %96 = vector.broadcast %cst_38 : f32 to vector<2x1xf32>
    %97 = arith.addf %93, %96 : vector<2x1xf32>
    %98 = math.rsqrt %97 : vector<2x1xf32>
    %99 = vector.broadcast %98 : vector<2x1xf32> to vector<2x32xf32>
    %100 = arith.mulf %95, %99 : vector<2x32xf32>
    %101 = vector.broadcast %8 : vector<1x32xf32> to vector<2x32xf32>
    %102 = arith.mulf %100, %101 : vector<2x32xf32>
    %103 = vector.broadcast %9 : vector<1x32xf32> to vector<2x32xf32>
    %104 = arith.addf %102, %103 : vector<2x32xf32>
    %105 = arith.truncf %104 : vector<2x32xf32> to vector<2x32xbf16>
    %c0_39 = arith.constant 0 : index
    %c0_40 = arith.constant 0 : index
    %106 = vector.load %arg8[%c0_39, %c0_40] : memref<32x32xbf16, #tpu.memory_space<vmem>>, vector<32x32xbf16>
    %cst_41 = arith.constant dense<0.000000e+00> : vector<2x32xf32>
    %107 = tpu.matmul %105, %106, %cst_41 {dimension_numbers = #tpu.dot_dimension_numbers<[1], [0], [0], [1], [0, 0, 1, 1], [], []>} : vector<2x32xbf16>, vector<32x32xbf16>, vector<2x32xf32> -> vector<2x32xf32>
    %108 = vector.broadcast %10 : vector<1x32xf32> to vector<2x32xf32>
    %109 = arith.addf %107, %108 : vector<2x32xf32>
    %c0_42 = arith.constant 0 : index
    %c0_43 = arith.constant 0 : index
    %110 = vector.load %arg10[%c0_42, %c0_43] : memref<2x32xf32, #tpu.memory_space<vmem>>, vector<2x32xf32>
    tpu.vector_store %arg10[%c0_42, %c0_43], %109 {strides = array<i32>} : memref<2x32xf32, #tpu.memory_space<vmem>>, vector<2x32xf32>,
    return
  }
}

</mosaic_0001>

<bundles_post_ra>
// kernel: tpu_custom_call.1
= control target key start
LH: loop header
LB: loop body
LE: loop exit
PB: predicated region body
PF: predicated region fallthrough
CT: control target
= control target key end

     0   :  { %v845_v1 = vmov 0.0   ;;  %vm846_vm0 = vmmov 0   ;;  %vm60_vm1 = vcmask 261120   ;;  %s1054_s0 = inlined_call_operand.vmem [shape: f32[16,32], index: 0, kind: input, shape index: {}]   ;;  %s1055_s1 = inlined_call_operand.vmem [shape: f32[2,32], index: 1, kind: input, shape index: {}]   ;;  %s1056_s2 = inlined_call_operand.vmem [shape: f32[2,16], index: 2, kind: input, shape index: {}]   ;;  %s1057_s3 = inlined_call_operand.vmem [shape: bf16[32,64], index: 3, kind: input, shape index: {}]   ;;  %s1058_s4 = inlined_call_operand.vmem [shape: bf16[32,64], index: 4, kind: input, shape index: {}]   ;;  %s1059_s5 = inlined_call_operand.vmem [shape: bf16[64,32], index: 5, kind: input, shape index: {}]   ;;  %s1060_s6 = inlined_call_operand.vmem [shape: bf16[32,128], index: 6, kind: input, shape index: {}]   ;;  %s1061_s7 = inlined_call_operand.vmem [shape: bf16[128,32], index: 7, kind: input, shape index: {}]   ;;  %s1062_s8 = inlined_call_operand.vmem [shape: bf16[32,32], index: 8, kind: input, shape index: {}]   ;;  %s1063_s9 = inlined_call_operand.vmem [shape: f32[7,128], index: 9, kind: input, shape index: {}]   ;;  %s1064_s10 = inlined_call_operand.hbm [shape: f32[2,32], index: 10, kind: output, shape index: {}]  }
   0x1   :  { %v793_v0 = vld [vmem:[%s1058_s4 + $0x8] sm:$0xff]   ;;  %714 = vmatprep.subr.bf16.mxu0 %v845_v1  ;;  %v794_v2 = vld [vmem:[%s1058_s4] sm:$0xff]   ;;  %736 = vmatprep.subr.bf16.mxu1 %v845_v1 }
   0x2   :  { %715 = vmatpush3.bf16.msra.mxu0 %v793_v0  ;;  %718 = vmatprep.mubr.msk.bf16.mxu0 %vm846_vm0, %v845_v1  ;;  %v37_v3 = vld [vmem:[%s1054_s0] sm:$0xff]  ;;  %v38_v4 = vld [vmem:[%s1054_s0 + $0x8] sm:$0xff] }
   0x3   :  { %716 = vmatprep.subr.bf16.mxu0 %v845_v1  ;;  %738 = vmatprep.mubr.msk.bf16.mxu1 %vm846_vm0, %v845_v1  ;;  %v795_v5 = vld [vmem:[%s1057_s3 + $0x8] sm:$0xff]   ;;  %v42_v6 = vpack.c.bf16 %v38_v4, %v37_v3  ;;  %v796_v7 = vld [vmem:[%s1057_s3] sm:$0xff]  }
   0x4   :  { %v932_v8 = vld [vmem:[%s1055_s1] sm:$0x3] }
   0x5   :  { %v43_v9 = vpack.c.bf16 %v932_v8, %v932_v8 }
   0x6   :  { %717 = vmatpush3.bf16.msra.mxu0 %v794_v2 }
   0x7   :  { %722 = vmatprep.subr.bf16.mxu0 %v845_v1 }
   0x9   :  { %719 = vmatmul.mubr.msk.bf16.vlgmr.msra.gmra.mxu0 %vm60_vm1, %v42_v6 }
   0xa   :  { %723 = vmatpush3.bf16.msra.mxu0 %v795_v5  ;;  %726 = vmatprep.mubr.msk.bf16.mxu0 %vm846_vm0, %v845_v1 }
   0xb   :  { %724 = vmatprep.subr.bf16.mxu0 %v845_v1 }
   0xe   :  { %725 = vmatpush3.bf16.msra.mxu0 %v796_v7 }
   0xf   :  { %730 = vmatprep.subr.bf16.mxu0 %v845_v1 }
  0x10   :  { %15 = vsyncpa [#allocation3], 0  ;;  %vm166_vm2 = vcmask 523264   ;;  %v40_v21 = vld [vmem:[%s1056_s2] sm:$0x3]  ;;  %vm213_vm3 = vcmask 123904   ;;  %v362_v62 = vlaneseq }
  0x11   :  { %727 = vmatmul.mubr.msk.bf16.vlgmr.msra.gmra.mxu0 %vm60_vm1, %v43_v9  ;;  %v797_v33 = vld [vmem:[%s1059_s5 + $0x18] sm:$0xff]   ;;  %v798_v34 = vld [vmem:[%s1059_s5 + $0x10] sm:$0xff]   ;;  %v799_v35 = vld [vmem:[%s1059_s5 + $0x8] sm:$0xff]   ;;  %vm226_vm4 = vcmask 130048   ;;  %vm347_vm5 = vcmask 254976  }
  0x12   :  { %732 = vmatprep.mubr.msk.bf16.mxu0 %vm846_vm0, %v845_v1  ;;  %v800_v40 = vld [vmem:[%s1059_s5] sm:$0xff]   ;;  %v801_v57 = vld [vmem:[%s1060_s6 + $0x8] sm:$0xff]   ;;  %v985_v63 = vshrl.u32 %v362_v62, 7 }
  0x13   :  { %v802_v58 = vld [vmem:[%s1060_s6] sm:$0xff]  }
  0x14   :  { %v364_v0 = vsub.s32 1, %v985_v63  ;;  %v991_v2 = vld [vmem:[%s1063_s9] sm:$0x7f]  ;;  %v369_v3 = vsub.s32 2, %v985_v63 }
  0x16   :  { %v365_v4 = vrot.slane %v991_v2, %v364_v0  ;;  %v370_v7 = vrot.slane %v991_v2, %v369_v3 }
  0xc9   :  { %v98_v10 = vpop.f32.mrf.mxu0 }
  0xcb   :  { %v720_v11 = vpop.f32.mrf.mxu0 }
  0xcc   :  { %v803_v11 = vld [vmem:[%s1061_s7 + $0x38] sm:$0xff]  }
  0xcd   :  { %v101_v12 = vpop.f32.mrf.mxu0 }
  0xce   :  { %v164_v13 = vpack.c.bf16 %v101_v12, %v98_v10  ;;  %v804_v12 = vld [vmem:[%s1061_s7 + $0x30] sm:$0xff]  }
  0xcf   :  { %v721_v14 = vpop.f32.mrf.mxu0 }
  0xd0   :  { %v171_v15 = vsel %vm166_vm2, %v164_v13, 0  ;;  %737 = vmatpush3.bf16.msra.mxu1 %v164_v13  ;;  %v805_v13 = vld [vmem:[%s1061_s7 + $0x28] sm:$0xff]   ;;  %v806_v14 = vld [vmem:[%s1061_s7 + $0x20] sm:$0xff]  }
  0xd1   :  { %v158_v16 = vpop.f32.mrf.mxu0  ;;  %731 = vmatpush3.bf16.xpose.msra.mxu0 %v171_v15  ;;  %754 = vmatprep.subr.bf16.mxu1 %v845_v1  ;;  %v807_v15 = vld [vmem:[%s1061_s7 + $0x18] sm:$0xff]  }
  0xd2   :  { %742 = vmatprep.subr.bf16.mxu0 %v845_v1  ;;  %v165_v18 = vpack.c.bf16 %v158_v16, %v158_v16  ;;  %v808_v16 = vld [vmem:[%s1061_s7 + $0x10] sm:$0xff]  }
  0xd3   :  { %v728_v17 = vpop.f32.mrf.mxu0 }
  0xd4   :  { %v809_v17 = vld [vmem:[%s1061_s7 + $0x8] sm:$0xff]  }
  0xd5   :  { %v161_v19 = vpop.f32.mrf.mxu0 }
  0xd6   :  { %v379_v19 = vsub.s32 0, %v985_v63 }
  0xd7   :  { %v729_v20 = vpop.f32.mrf.mxu0 }
  0xd8   :  { %733 = vmatmul.mubr.msk.bf16.vlgmr.msra.gmra.mxu0 %vm166_vm2, %v165_v18  ;;  %v810_v18 = vld [vmem:[%s1061_s7] sm:$0xff]   ;;  %v380_v20 = vrot.slane %v991_v2, %v379_v19 }
  0xd9   :  { %750 = vmatprep.mubr.msk.bf16.mxu0 %vm846_vm0, %v845_v1  ;;  %743 = vmatpush3.bf16.msra.mxu0 %v797_v33 }
  0xda   :  { %744 = vmatprep.subr.bf16.mxu0 %v845_v1 }
  0xdd   :  { %745 = vmatpush3.bf16.msra.mxu0 %v798_v34 }
  0xde   :  { %746 = vmatprep.subr.bf16.mxu0 %v845_v1 }
  0xe1   :  { %747 = vmatpush3.bf16.msra.mxu0 %v799_v35 }
  0xe2   :  { %748 = vmatprep.subr.bf16.mxu0 %v845_v1 }
  0xe5   :  { %749 = vmatpush3.bf16.msra.mxu0 %v800_v40 }
  0xe6   :  { %782 = vmatprep.subr.bf16.mxu0 %v845_v1 }
 0x198   :  { %v207_v22 = vpop.f32.mrf.mxu0 }
 0x199   :  { %v208_v23 = vadd.f32 %v207_v22, %v40_v21 }
 0x19a   :  { %v734_v24 = vpop.f32.mrf.mxu0 }
 0x19b   :  { %v214_v25 = vsel %vm213_vm3, %v208_v23, -inf }
 0x19c   :  { %215 = vmax.xlane.f32.xlu0 %v214_v25  ;;  %v210_v26 = vpop.f32.mrf.mxu0 }
 0x19e   :  { %v735_v27 = vpop.f32.mrf.mxu0 }
 0x225   :  { %v216_v28 = vpop.xlane.xlu0 %215 }
 0x226   :  { %v217_v29 = vsub.f32 %v208_v23, %v216_v28 }
 0x228   :  { %v218_v30 = vmul.f32 1.442695, %v217_v29 }
 0x22a   :  { %813 = vpow2.f32 %v218_v30 }
 0x237   :  { %v814_v31 = vpop.eup %813 }
 0x238   :  { %v220_v32 = vsel %vm213_vm3, %v814_v31, 0.0 }
 0x239   :  { %221 = vadd.xlane.f32.xlu0 %v220_v32 }
 0x2c2   :  { %v222_v36 = vpop.xlane.xlu0 %221 }
 0x2c3   :  { %815 = vrcp.f32 %v222_v36  ;;  %v464_v36 = vsub.s32 3, %v985_v63 }
 0x2d0   :  { %v816_v37 = vpop.eup %815 }
 0x2d1   :  { %v224_v38 = vmul.f32 %v816_v37, %v814_v31  ;;  %v465_v37 = vrot.slane %v991_v2, %v464_v36 }
 0x2d3   :  { %v225_v39 = vpack.c.bf16 %v224_v38, %v224_v38 }
 0x2d5   :  { %739 = vmatmul.mubr.msk.bf16.vlgmr.msra.gmra.mxu1 %vm226_vm4, %v225_v39 }
 0x2d6   :  { %758 = vmatprep.mubr.msk.bf16.mxu1 %vm846_vm0, %v845_v1  ;;  %755 = vmatpush3.bf16.msra.mxu1 %v801_v57 }
 0x2d7   :  { %756 = vmatprep.subr.bf16.mxu1 %v845_v1 }
 0x2da   :  { %757 = vmatpush3.bf16.msra.mxu1 %v802_v58 }
 0x2db   :  { %762 = vmatprep.subr.bf16.mxu1 %v845_v1 }
 0x395   :  { %v264_v41 = vpop.f32.mrf.mxu1 }
 0x396   :  { %v270_v42 = vpack.c.bf16 %v264_v41, %v264_v41 }
 0x397   :  { %v740_v43 = vpop.f32.mrf.mxu1 }
 0x398   :  { %751 = vmatmul.mubr.msk.bf16.vlgmr.msra.gmra.mxu0 %vm166_vm2, %v270_v42 }
 0x399   :  { %v267_v44 = vpop.f32.mrf.mxu1  ;;  %786 = vmatprep.mubr.msk.bf16.mxu0 %vm846_vm0, %v845_v1 }
 0x39b   :  { %v741_v45 = vpop.f32.mrf.mxu1 }
 0x458   :  { %v340_v46 = vpop.f32.mrf.mxu0 }
 0x459   :  { %v346_v47 = vadd.f32 %v340_v46, %v932_v8 }
 0x45a   :  { %v752_v48 = vpop.f32.mrf.mxu0 }
 0x45b   :  { %v348_v49 = vsel %vm347_vm5, %v346_v47, 0.0 }
 0x45c   :  { %349 = vadd.xlane.f32.xlu1 %v348_v49  ;;  %v343_v50 = vpop.f32.mrf.mxu0 }
 0x45d   :  { %v811_v50 = vld [vmem:[%s1062_s8 + $0x8] sm:$0xff]  }
 0x45e   :  { %v753_v51 = vpop.f32.mrf.mxu0  ;;  %783 = vmatpush3.bf16.msra.mxu0 %v811_v50 }
 0x45f   :  { %v812_v51 = vld [vmem:[%s1062_s8] sm:$0xff]   ;;  %784 = vmatprep.subr.bf16.mxu0 %v845_v1  ;;  %s847_s8 = smov [#allocation2]  }
 0x460   :  { %s649_s29 = sshll.u32 %s847_s8, 4  ;;  %s650_s29 = int_to_ptr.vmem [resolvable:$true] %s649_s29 }
 0x461   :  { %s823_s30 = scalar_lea.vmem %s650_s29, 32  ;;  %p828_p1 = scmp.lt.s32.totalorder %s650_s29, %s650_s29 }
 0x462   :  { %785 = vmatpush3.bf16.msra.mxu0 %v812_v51  ;;  %p824_p0 = scmp.ne.s32.totalorder %s650_s29, %s823_s30  ;;  %p829_p2 = scmp.lt.s32.totalorder %s823_s30, %s823_s30 }
 0x464   :  { %p830_p3 = por %p829_p2, %p828_p1 }
 0x466   :  { %p831_p4 = pnand %p830_p3, %p824_p0 }
 0x4e5   :  { %v350_v52 = vpop.xlane.xlu1 %349 }
 0x4e6   :  { %v352_v53 = vmul.f32 0.03125, %v350_v52 }
 0x4e8   :  { %v353_v54 = vsub.f32 %v346_v47, %v352_v53 }
 0x4ea   :  { %v354_v55 = vmul.f32 %v353_v54, %v353_v54 }
 0x4ec   :  { %v355_v56 = vsel %vm347_vm5, %v354_v55, 0.0  ;;  %v570_v55 = vsub.s32 4, %v985_v63 }
 0x4ed   :  { %356 = vadd.xlane.f32.xlu1 %v355_v56  ;;  %v575_v56 = vsub.s32 5, %v985_v63 }
 0x4ee   :  { %v571_v57 = vrot.slane %v991_v2, %v570_v55 }
 0x576   :  { %v357_v59 = vpop.xlane.xlu1 %356 }
 0x577   :  { %v358_v60 = vmul.f32 0.03125, %v357_v59 }
 0x579   :  { %v359_v61 = vadd.f32 1e-12, %v358_v60  ;;  %v576_v60 = vrot.slane %v991_v2, %v575_v56 }
 0x57b   :  { %817 = vrsqrt.f32 %v359_v61 }
 0x588   :  { %v818_v5 = vpop.eup %817 }
 0x589   :  { %v361_v6 = vmul.f32 %v818_v5, %v353_v54 }
 0x58b   :  { %v366_v8 = vmul.f32 %v365_v4, %v361_v6 }
 0x58d   :  { %v371_v9 = vadd.f32 %v370_v7, %v366_v8 }
 0x58f   :  { %v372_v10 = vpack.c.bf16 %v371_v9, %v371_v9 }
 0x591   :  { %759 = vmatmul.mubr.msk.bf16.vlgmr.msra.gmra.mxu1 %vm60_vm1, %v372_v10 }
 0x592   :  { %778 = vmatprep.mubr.msk.bf16.mxu1 %vm846_vm0, %v845_v1  ;;  %763 = vmatpush3.bf16.msra.mxu1 %v803_v11 }
 0x593   :  { %764 = vmatprep.subr.bf16.mxu1 %v845_v1 }
 0x596   :  { %765 = vmatpush3.bf16.msra.mxu1 %v804_v12 }
 0x597   :  { %766 = vmatprep.subr.bf16.mxu1 %v845_v1 }
 0x59a   :  { %767 = vmatpush3.bf16.msra.mxu1 %v805_v13 }
 0x59b   :  { %768 = vmatprep.subr.bf16.mxu1 %v845_v1 }
 0x59e   :  { %769 = vmatpush3.bf16.msra.mxu1 %v806_v14 }
 0x59f   :  { %770 = vmatprep.subr.bf16.mxu1 %v845_v1 }
 0x5a2   :  { %771 = vmatpush3.bf16.msra.mxu1 %v807_v15 }
 0x5a3   :  { %772 = vmatprep.subr.bf16.mxu1 %v845_v1 }
 0x5a6   :  { %773 = vmatpush3.bf16.msra.mxu1 %v808_v16 }
 0x5a7   :  { %774 = vmatprep.subr.bf16.mxu1 %v845_v1 }
 0x5aa   :  { %775 = vmatpush3.bf16.msra.mxu1 %v809_v17 }
 0x5ab   :  { %776 = vmatprep.subr.bf16.mxu1 %v845_v1  ;;  %v585_v1 = vsub.s32 6, %v985_v63 }
 0x5ad   :  { %v586_v3 = vrot.slane %v991_v2, %v585_v1 }
 0x5ae   :  { %777 = vmatpush3.bf16.msra.mxu1 %v810_v18 }
 0x651   :  { %v430_v21 = vpop.f32.mrf.mxu1 }
 0x652   :  { %v431_v22 = vadd.f32 %v430_v21, %v380_v20 }
 0x653   :  { %v760_v23 = vpop.f32.mrf.mxu1 }
 0x654   :  { %v436_v24 = vmul.f32 %v431_v22, %v431_v22 }
 0x655   :  { %v433_v25 = vpop.f32.mrf.mxu1 }
 0x656   :  { %v437_v26 = vmul.f32 %v436_v24, %v431_v22 }
 0x657   :  { %v761_v27 = vpop.f32.mrf.mxu1 }
 0x658   :  { %v438_v28 = vmul.f32 0.044715, %v437_v26 }
 0x65a   :  { %v439_v29 = vadd.f32 %v438_v28, %v431_v22 }
 0x65c   :  { %v440_v30 = vmul.f32 0.7978846, %v439_v29 }
 0x65e   :  { %819 = vtanh.f32 %v440_v30 }
 0x66b   :  { %v820_v31 = vpop.eup %819 }
 0x66c   :  { %v442_v32 = vadd.f32 1.0, %v820_v31 }
 0x66e   :  { %v443_v33 = vmul.f32 0.5, %v442_v32 }
 0x670   :  { %v444_v34 = vmul.f32 %v443_v33, %v431_v22 }
 0x672   :  { %v445_v35 = vpack.c.bf16 %v444_v34, %v444_v34 }
 0x674   :  { %779 = vmatmul.mubr.bf16.vlgmr.msra.gmra.mxu1 %v445_v35 }
 0x734   :  { %v548_v38 = vpop.f32.mrf.mxu1 }
 0x735   :  { %v549_v39 = vadd.f32 %v548_v38, %v465_v37 }
 0x736   :  { %v780_v40 = vpop.f32.mrf.mxu1 }
 0x737   :  { %v554_v41 = vadd.f32 %v549_v39, %v371_v9 }
 0x738   :  { %v551_v42 = vpop.f32.mrf.mxu1 }
 0x739   :  { %v555_v43 = vsel %vm347_vm5, %v554_v41, 0.0 }
 0x73a   :  { %556 = vadd.xlane.f32.xlu0 %v555_v43  ;;  %v781_v44 = vpop.f32.mrf.mxu1 }
 0x7c3   :  { %v557_v45 = vpop.xlane.xlu0 %556 }
 0x7c4   :  { %v558_v46 = vmul.f32 0.03125, %v557_v45 }
 0x7c6   :  { %v559_v47 = vsub.f32 %v554_v41, %v558_v46 }
 0x7c8   :  { %v560_v48 = vmul.f32 %v559_v47, %v559_v47 }
 0x7ca   :  { %v561_v49 = vsel %vm347_vm5, %v560_v48, 0.0 }
 0x7cb   :  { %562 = vadd.xlane.f32.xlu1 %v561_v49 }
 0x854   :  { %v563_v52 = vpop.xlane.xlu1 %562 }
 0x855   :  { %v564_v53 = vmul.f32 0.03125, %v563_v52 }
 0x857   :  { %v565_v54 = vadd.f32 1e-12, %v564_v53 }
 0x859   :  { %821 = vrsqrt.f32 %v565_v54 }
 0x866   :  { %v822_v58 = vpop.eup %821 }
 0x867   :  { %v567_v59 = vmul.f32 %v822_v58, %v559_v47 }
 0x869   :  { %v572_v61 = vmul.f32 %v571_v57, %v567_v59 }
 0x86b   :  { %v577_v62 = vadd.f32 %v576_v60, %v572_v61 }
 0x86d   :  { %v578_v0 = vpack.c.bf16 %v577_v62, %v577_v62 }
 0x86f   :  { %787 = vmatmul.mubr.msk.bf16.vlgmr.msra.gmra.mxu0 %vm60_vm1, %v578_v0 }
 0x92f   :  { %v636_v4 = vpop.f32.mrf.mxu0 }
 0x930   :  { %v637_v5 = vadd.f32 %v636_v4, %v586_v3 }
 0x931   :  { %v788_v6 = vpop.f32.mrf.mxu0 }
 0x932   :  { %642 = vst.msk [vmem:[#allocation2] sm:$0x3] %vm347_vm5, %v637_v5 }
 0x933   :  { %v639_v7 = vpop.f32.mrf.mxu0 }
 0x934   :  { %834 = shalt.err (!%p831_p4)
}
 0x935   :  { %652 = dma.vmem_to_hbm [thread:$0]  %s650_s29, 32, %s1064_s10, [#allocation3]   ;;  %v789_v63 = vpop.f32.mrf.mxu0 }
 0x936   :  { %843 = dma.done.wait [#allocation3], 32  }
 0x937   :  { %844 = vsyncadd [#allocation3], 4294967264 }
 0x938   :  { %656 = vsyncpa [#allocation3], 1 }

</bundles_post_ra>
